<compile_context>
chip_gen: v7x
topology: tpu7x:2x2x1
jax: 0.10.0
libtpu: 0.0.40
codegen_flags: <defaults>
</compile_context>

<pallas_src>
from functools import partial

import jax
import jax.numpy as jnp
from jax.experimental import pallas as pl
from jax.experimental.pallas import tpu as pltpu


# ----------------------------------------------------------------------------
# Fused Pallas kernel: avg-pool -> FC -> ReLU -> FC -> sigmoid -> scale,
# for a sub-batch of Nb images per grid step.
# ----------------------------------------------------------------------------
def _channel_attention_kernel(x_ref, w1t_ref, w2t_ref, out_ref, *, inv_hw):
    # x_ref:   (Nb, C, HW)  sub-batch; channels on sublanes, spatial on lanes
    # w1t_ref: (C, mid)     first 1x1 conv weight, pre-transposed (bias=False)
    # w2t_ref: (mid, C)     second 1x1 conv weight, pre-transposed (bias=False)
    # out_ref: (Nb, C, HW)
    x = x_ref[...]                                               # (Nb, C, HW)

    # Global average pool over the spatial (lane) axis; f32 accumulation so
    # bf16 inputs don't drift for large H*W.
    pooled = jnp.sum(x, axis=-1, dtype=jnp.float32) * inv_hw     # (Nb, C) f32

    # Two 1x1 convs batched across the sub-batch (single MXU matmul each).
    z = jnp.dot(pooled, w1t_ref[...].astype(jnp.float32),
                preferred_element_type=jnp.float32)              # (Nb, mid)
    z = jnp.maximum(z, 0.0)                                      # ReLU
    att = jax.nn.sigmoid(
        jnp.dot(z, w2t_ref[...].astype(jnp.float32),
                preferred_element_type=jnp.float32))             # (Nb, C)

    # Per-(image, channel) scale broadcast across the spatial (lane) axis.
    out_ref[...] = (x * att.astype(x.dtype)[:, :, None]).astype(out_ref.dtype)


def channel_attention(x_nchw, w1, w2, *, target_block_bytes=1 << 20):
    """x_nchw: (N, C, H, W);  w1: (mid, C);  w2: (C, mid)."""
    N, C, H, W = x_nchw.shape
    mid = w1.shape[0]
    HW = H * W
    x = x_nchw.reshape(N, C, HW)            # metadata-only reshape, no transpose

    # --- pick sub-batch size: ~1 MiB x-blocks, but keep >=2 grid steps so the
    # two TensorCores on v7x both get work (megacore "parallel" semantics).
    itemsize = jnp.dtype(x.dtype).itemsize
    per_image_bytes = C * HW * itemsize
    nb = max(1, int(target_block_bytes // per_image_bytes))
    nb = min(nb, N)
    if N > 1:
        nb = min(nb, -(-N // 2))            # ceil(N/2) -> grid length >= 2
    grid_n = pl.cdiv(N, nb)                 # partial final block is handled
                                            # (OOB reads padded, OOB writes dropped)

    # Advisory cost estimate: memory-bound (x read once + out written once).
    cost = pl.CostEstimate(
        flops=2 * N * C * mid * 2 + N * C * HW,       # two FCs + pooling adds
        transcendentals=N * C,                        # sigmoid
        bytes_accessed=(2 * N * C * HW + 2 * C * mid) * itemsize,
    )

    out = pl.pallas_call(
        partial(_channel_attention_kernel, inv_hw=1.0 / HW),
        out_shape=jax.ShapeDtypeStruct((N, C, HW), x.dtype),
        grid=(grid_n,),
        in_specs=[
            pl.BlockSpec((nb, C, HW), lambda n: (n, 0, 0)),
            pl.BlockSpec((C, mid), lambda n: (0, 0)),   # resident weights
            pl.BlockSpec((mid, C), lambda n: (0, 0)),   # resident weights
        ],
        out_specs=pl.BlockSpec((nb, C, HW), lambda n: (n, 0, 0)),
        compiler_params=pltpu.CompilerParams(
            dimension_semantics=("parallel",),          # batch blocks independent
        ),
        cost_estimate=cost,
    )(x, w1.T, w2.T)                       # tiny one-time transposes in XLA
    return out.reshape(N, C, H, W)


# ----------------------------------------------------------------------------
# Pure-JAX reference for correctness check
# ----------------------------------------------------------------------------
def channel_attention_ref(x, w1, w2):
    xf = x.astype(jnp.float32)
    pooled = jnp.mean(xf, axis=(2, 3))                       # (N, C)
    z = jnp.maximum(jnp.einsum("mc,nc->nm", w1, pooled), 0.0)
    att = jax.nn.sigmoid(jnp.einsum("cm,nm->nc", w2, z))     # (N, C)
    return xf * att[:, :, None, None]


if __name__ == "__main__":
    key = jax.random.PRNGKey(0)
    kx, k1, k2 = jax.random.split(key, 3)

    # Small shapes consistent with the module: x has out_channels channels.
    N, C, H, W = 4, 32, 16, 16
    reduction = 1                      # module default
    mid = C // reduction

    x = jax.random.normal(kx, (N, C, H, W), jnp.float32)
    w1 = jax.random.normal(k1, (mid, C), jnp.float32) * (1.0 / jnp.sqrt(C))
    w2 = jax.random.normal(k2, (C, mid), jnp.float32) * (1.0 / jnp.sqrt(mid))

    fwd = jax.jit(channel_attention)

    # f32, batch divides the sub-batch evenly (grid of 2 blocks).
    out = jax.block_until_ready(fwd(x, w1, w2))
    assert out.shape == (N, C, H, W), out.shape
    ref = channel_attention_ref(x, w1, w2)
    err = float(jnp.max(jnp.abs(out - ref)) / (jnp.max(jnp.abs(ref)) + 1e-8))
    assert err < 1e-4, f"f32 mismatch vs reference: rel max err = {err}"

    # f32, batch NOT divisible by the sub-batch (exercises the partial block).
    x3 = x[:3]
    out3 = jax.block_until_ready(fwd(x3, w1, w2))
    ref3 = channel_attention_ref(x3, w1, w2)
    err3 = float(jnp.max(jnp.abs(out3 - ref3)) / (jnp.max(jnp.abs(ref3)) + 1e-8))
    assert err3 < 1e-4, f"partial-block mismatch vs reference: rel max err = {err3}"

    # bf16 I/O path (f32 pooling accumulation inside the kernel).
    xb = x.astype(jnp.bfloat16)
    outb = jax.block_until_ready(fwd(xb, w1, w2))
    assert outb.dtype == jnp.bfloat16
    refb = channel_attention_ref(xb, w1, w2)
    errb = float(jnp.max(jnp.abs(outb.astype(jnp.float32) - refb))
                 / (jnp.max(jnp.abs(refb)) + 1e-8))
    assert errb < 5e-2, f"bf16 mismatch vs reference: rel max err = {errb}"

    print("KERNEL_OK")
</pallas_src>

<mosaic_0001>
module attributes {stable_mosaic.version = 11 : i64} {
  func.func @_channel_attention_kernel(%arg0: i32, %arg1: memref<2x32x256xf32, #tpu.memory_space<vmem>>, %arg2: memref<32x32xf32, #tpu.memory_space<vmem>>, %arg3: memref<32x32xf32, #tpu.memory_space<vmem>>, %arg4: memref<2x32x256xf32, #tpu.memory_space<vmem>>) attributes {dimension_semantics = [#tpu.dimension_semantics<parallel>], iteration_bounds = array<i64: 2>, scalar_prefetch = 0 : i64, scratch_operands = 0 : i64, tpu.core_type = #tpu.core_type<tc>, window_params = [{transform_indices = @transform_0, window_bounds = array<i64: 2, 32, 256>}, {pipeline_mode = #tpu.pipeline_mode<synchronous>, transform_indices = @transform_1, window_bounds = array<i64: 32, 32>}, {pipeline_mode = #tpu.pipeline_mode<synchronous>, transform_indices = @transform_2, window_bounds = array<i64: 32, 32>}, {transform_indices = @transform_3, window_bounds = array<i64: 2, 32, 256>}]} {
    %c0 = arith.constant 0 : index
    %c0_0 = arith.constant 0 : index
    %c0_1 = arith.constant 0 : index
    %0 = vector.load %arg1[%c0, %c0_0, %c0_1] : memref<2x32x256xf32, #tpu.memory_space<vmem>>, vector<2x32x256xf32>
    %cst = arith.constant dense<0.000000e+00> : vector<2x32xf32>
    %1 = vector.multi_reduction <add>, %0, %cst [2] : vector<2x32x256xf32> to vector<2x32xf32>
    %cst_2 = arith.constant 3.906250e-03 : f32
    %2 = vector.broadcast %cst_2 : f32 to vector<2x32xf32>
    %3 = arith.mulf %1, %2 : vector<2x32xf32>
    %c0_3 = arith.constant 0 : index
    %c0_4 = arith.constant 0 : index
    %4 = vector.load %arg2[%c0_3, %c0_4] : memref<32x32xf32, #tpu.memory_space<vmem>>, vector<32x32xf32>
    %cst_5 = arith.constant dense<0.000000e+00> : vector<2x32xf32>
    %5 = tpu.matmul %3, %4, %cst_5 {dimension_numbers = #tpu.dot_dimension_numbers<[1], [0], [0], [1], [0, 0, 1, 1], [], []>} : vector<2x32xf32>, vector<32x32xf32>, vector<2x32xf32> -> vector<2x32xf32>
    %cst_6 = arith.constant 0.000000e+00 : f32
    %6 = vector.broadcast %cst_6 : f32 to vector<2x32xf32>
    %7 = arith.maximumf %5, %6 : vector<2x32xf32>
    %c0_7 = arith.constant 0 : index
    %c0_8 = arith.constant 0 : index
    %8 = vector.load %arg3[%c0_7, %c0_8] : memref<32x32xf32, #tpu.memory_space<vmem>>, vector<32x32xf32>
    %cst_9 = arith.constant dense<0.000000e+00> : vector<2x32xf32>
    %9 = tpu.matmul %7, %8, %cst_9 {dimension_numbers = #tpu.dot_dimension_numbers<[1], [0], [0], [1], [0, 0, 1, 1], [], []>} : vector<2x32xf32>, vector<32x32xf32>, vector<2x32xf32> -> vector<2x32xf32>
    %10 = arith.negf %9 : vector<2x32xf32>
    %11 = math.exp %10 : vector<2x32xf32>
    %cst_10 = arith.constant 1.000000e+00 : f32
    %12 = vector.broadcast %cst_10 : f32 to vector<2x32xf32>
    %13 = arith.addf %12, %11 : vector<2x32xf32>
    %14 = arith.divf %12, %13 : vector<2x32xf32>
    %15 = vector.shape_cast %14 : vector<2x32xf32> to vector<2x32x1xf32>
    %16 = vector.broadcast %15 : vector<2x32x1xf32> to vector<2x32x256xf32>
    %17 = arith.mulf %0, %16 : vector<2x32x256xf32>
    %c0_11 = arith.constant 0 : index
    %c0_12 = arith.constant 0 : index
    %c0_13 = arith.constant 0 : index
    %18 = vector.load %arg4[%c0_11, %c0_12, %c0_13] : memref<2x32x256xf32, #tpu.memory_space<vmem>>, vector<2x32x256xf32>
    tpu.vector_store %arg4[%c0_11, %c0_12, %c0_13], %17 {strides = array<i32>} : memref<2x32x256xf32, #tpu.memory_space<vmem>>, vector<2x32x256xf32>,
    return
  }
  func.func @transform_0(%arg0: i32) -> (i32, i32, i32) {
    %c0_i32 = arith.constant 0 : i32
    %c0_i32_0 = arith.constant 0 : i32
    %c0_i32_1 = arith.constant 0 : i32
    return %arg0, %c0_i32, %c0_i32_0 : i32, i32, i32
  }
  func.func @transform_1(%arg0: i32) -> (i32, i32) {
    %c0_i32 = arith.constant 0 : i32
    %c0_i32_0 = arith.constant 0 : i32
    %c0_i32_1 = arith.constant 0 : i32
    return %c0_i32, %c0_i32_0 : i32, i32
  }
  func.func @transform_2(%arg0: i32) -> (i32, i32) {
    %c0_i32 = arith.constant 0 : i32
    %c0_i32_0 = arith.constant 0 : i32
    %c0_i32_1 = arith.constant 0 : i32
    return %c0_i32, %c0_i32_0 : i32, i32
  }
  func.func @transform_3(%arg0: i32) -> (i32, i32, i32) {
    %c0_i32 = arith.constant 0 : i32
    %c0_i32_0 = arith.constant 0 : i32
    %c0_i32_1 = arith.constant 0 : i32
    return %arg0, %c0_i32, %c0_i32_0 : i32, i32, i32
  }
}

</mosaic_0001>

<bundles_post_ra>
// kernel: channel_attention.1
= control target key start
LH: loop header
LB: loop body
LE: loop exit
PB: predicated region body
PF: predicated region fallthrough
CT: control target
= control target key end

     0   :  { %s680_s12 = smov 0   ;;  %s810_s0 = inlined_call_operand.vmem [shape: f32[4,32,256], index: 0, kind: input, shape index: {}]   ;;  %s811_s1 = inlined_call_operand.vmem [shape: f32[32,32], index: 1, kind: input, shape index: {}]   ;;  %s812_s2 = inlined_call_operand.vmem [shape: f32[32,32], index: 2, kind: input, shape index: {}]   ;;  %s813_s3 = inlined_call_operand.vmem [shape: f32[4,32,256], index: 3, kind: output, shape index: {}]  }
   0x1 LB: > { %s572_s13 = sadd.s32 4294967295, %s655_s12   ;;  %p576_p0 = scmp.ge.s32.totalorder %s655_s12, 1  ;;  %s655_s12 = sphi %s680_s12, %s13_s12  }
   0x2   : > { %p139_p1 = scmp.lt.s32.totalorder %s655_s12, 3 }
   0x4   : > { %p140_p2 = pnand %p576_p0, %p139_p1 }
   0x5   : > { %s577_s14 = sshll.u32 (!%p140_p2), %s572_s13, 1  ;;  %v227_v24 = vld [vmem:[%s811_s1] sm:$0xff] (!%p140_p2)  ;;  %v228_v25 = vld [vmem:[%s811_s1 + $0x8] sm:$0xff] (!%p140_p2)  ;;  %v657_v27 = vmov (!%p140_p2), 0.0|0.0   ;;  %v229_v28 = vld [vmem:[%s811_s1 + $0x10] sm:$0xff] (!%p140_p2)  ;;  %vm658_vm0 = vmmov (!%p140_p2), 0   ;;  %v239_v35 = vlaneseq (!%p140_p2) }
   0x6   : > { %143 = sbr.rel (%p140_p2) target bundleno = 768 (0x300), region = 32  ;;  %p166_p3 = scmp.lt.s32.totalorder (!%p140_p2), %s577_s14, 3  ;;  %v623_v26 = vpack.c.bf16 (!%p140_p2), %v228_v25, %v227_v24  ;;  %622 = vmatprep.subr.bf16.mxu0 (!%p140_p2), %v657_v27  ;;  %628 = vmatprep.subr.bf16.mxu1 (!%p140_p2), %v657_v27  ;;  %v230_v29 = vld [vmem:[%s811_s1 + $0x18] sm:$0xff] (!%p140_p2)  ;;  %v659_v31 = vmov (!%p140_p2), 0.0   ;;  %v361_v32 = vld [vmem:[%s812_s2] sm:$0xff] (!%p140_p2)  ;;  %v362_v33 = vld [vmem:[%s812_s2 + $0x8] sm:$0xff] (!%p140_p2) }
   0x7   : > { %v626_v30 = vpack.c.bf16 (!%p140_p2), %v230_v29, %v229_v28  ;;  %608 = vmatprep.mubr.msk.f32.mxu0 (!%p140_p2), %vm658_vm0, %v659_v31  ;;  %619 = vmatprep.mubr.msk.f32.mxu1 (!%p140_p2), %vm658_vm0, %v659_v31  ;;  %v629_v34 = vpack.c.bf16 (!%p140_p2), %v362_v33, %v361_v32  ;;  %v240_v37 = vand.u32 (!%p140_p2), 127, %v239_v35  ;;  %v242_v42 = vshrl.u32 (!%p140_p2), %v239_v35, 7  ;;  %v363_v28 = vld [vmem:[%s812_s2 + $0x10] sm:$0xff] (!%p140_p2)  ;;  %v364_v29 = vld [vmem:[%s812_s2 + $0x18] sm:$0xff] (!%p140_p2) }
   0x8   : > { %624 = vmatpush3.bf16.msra.mxu0 (!%p140_p2), %v623_v26  ;;  %vm250_vm1 = vcmask (!%p140_p2), 130112   ;;  %vm257_vm2 = vcmask (!%p140_p2), 195712   ;;  %vm264_vm3 = vcmask (!%p140_p2), 261312   ;;  %vm285_vm4 = vcmask (!%p140_p2), 1041409  }
   0x9   : > { %625 = vmatprep.subr.bf16.mxu0 (!%p140_p2), %v657_v27  ;;  %630 = vmatpush3.bf16.msra.mxu1 (!%p140_p2), %v629_v34  ;;  %v245_v39 = vadd.s32 (!%p140_p2), 4294967288, %v240_v37  ;;  %v252_v41 = vadd.s32 (!%p140_p2), 4294967280, %v240_v37  ;;  %v259_v46 = vadd.s32 (!%p140_p2), 4294967272, %v240_v37  ;;  %v243_v50 = vsub.s32 (!%p140_p2), %v240_v37, %v242_v42 }
   0xa   : > { %631 = vmatprep.subr.bf16.mxu1 (!%p140_p2), %v657_v27  ;;  %vm287_vm5 = vcmask (!%p140_p2), 261120  }
   0xb   : > { %v248_v44 = vsub.s32 (!%p140_p2), %v245_v39, %v242_v42  ;;  %v255_v48 = vsub.s32 (!%p140_p2), %v252_v41, %v242_v42  ;;  %v262_v57 = vsub.s32 (!%p140_p2), %v259_v46, %v242_v42  ;;  %v446_v39 = vsub.s32 (!%p140_p2), 0, %v242_v42 }
   0xc   : > { %627 = vmatpush3.bf16.msra.mxu0 (!%p140_p2), %v626_v30  ;;  %v632_v30 = vpack.c.bf16 (!%p140_p2), %v364_v29, %v363_v28 }
   0xd   : > { %s815_s14 = smov (!%p166_p3, %s577_s14), 3 }
   0xe   : > { %s588_s15 = sshll.u32 %s815_s14, 6  ;;  %633 = vmatpush3.bf16.msra.mxu1 %v632_v30 }
   0xf   : > { %s170_s18 = scalar_lea.vmem %s810_s0, %s588_s15  ;;  %s773_s10 = scalar_lea.vmem %s813_s3, %s588_s15 }
  0x10   : > { %v696_v0 = vld [vmem:[%s170_s18 + $0x40] sm:$0xff]  ;;  %v698_v1 = vld [vmem:[%s170_s18 + $0x48] sm:$0xff]  ;;  %v706_v5 = vld [vmem:[%s170_s18 + $0x50] sm:$0xff] }
  0x11   : > { %v700_v2 = vld [vmem:[%s170_s18] sm:$0xff]  ;;  %v207_v3 = vadd.f32 %v698_v1, %v696_v0  ;;  %v704_v4 = vld [vmem:[%s170_s18 + $0x8] sm:$0xff]  ;;  %v708_v6 = vld [vmem:[%s170_s18 + $0x58] sm:$0xff] }
  0x12   : > { %v195_v7 = vadd.f32 %v704_v4, %v700_v2  ;;  %v712_v8 = vld [vmem:[%s170_s18 + $0x10] sm:$0xff]  ;;  %v714_v9 = vld [vmem:[%s170_s18 + $0x18] sm:$0xff]  ;;  %v210_v10 = vadd.f32 %v708_v6, %v706_v5  ;;  %v720_v12 = vld [vmem:[%s170_s18 + $0x60] sm:$0xff] }
  0x13   : > { %208 = vadd.xlane.f32.xlu1 %v207_v3  ;;  %v198_v11 = vadd.f32 %v714_v9, %v712_v8  ;;  %v722_v13 = vld [vmem:[%s170_s18 + $0x68] sm:$0xff]  ;;  %v724_v14 = vld [vmem:[%s170_s18 + $0x20] sm:$0xff]  ;;  %v732_v18 = vld [vmem:[%s170_s18 + $0x70] sm:$0xff] }
  0x14   : > { %196 = vadd.xlane.f32.xlu0 %v195_v7  ;;  %v726_v15 = vld [vmem:[%s170_s18 + $0x28] sm:$0xff]  ;;  %v213_v16 = vadd.f32 %v722_v13, %v720_v12  ;;  %v734_v19 = vld [vmem:[%s170_s18 + $0x78] sm:$0xff]  ;;  %v736_v20 = vld [vmem:[%s170_s18 + $0x30] sm:$0xff] }
  0x15   : > { %v201_v17 = vadd.f32 %v726_v15, %v724_v14  ;;  %v738_v21 = vld [vmem:[%s170_s18 + $0x38] sm:$0xff]  ;;  %v216_v22 = vadd.f32 %v734_v19, %v732_v18 }
  0x16   : > { %v204_v23 = vadd.f32 %v738_v21, %v736_v20 }
  0x17   : > { %211 = vadd.xlane.f32.xlu1 %v210_v10 }
  0x18   : > { %199 = vadd.xlane.f32.xlu0 %v198_v11 }
  0x1b   : > { %214 = vadd.xlane.f32.xlu1 %v213_v16 }
  0x1c   : > { %202 = vadd.xlane.f32.xlu0 %v201_v17 }
  0x1f   : > { %217 = vadd.xlane.f32.xlu1 %v216_v22 }
  0x20   : > { %205 = vadd.xlane.f32.xlu0 %v204_v23 }
  0xa0   : > { %v209_v36 = vpop.xlane.xlu1 %208 }
  0xa1   : > { %v197_v38 = vpop.xlane.xlu0 %196  ;;  %v223_v51 = vmul.f32 0.00390625, %v209_v36 }
  0xa2   : > { %v219_v54 = vmul.f32 0.00390625, %v197_v38 }
  0xa3   : > { %v269_v61 = vrot.slane %v223_v51, %v243_v50 }
  0xa4   : > { %v212_v40 = vpop.xlane.xlu1 %211  ;;  %v244_v7 = vrot.slane %v219_v54, %v243_v50 }
  0xa5   : > { %v200_v43 = vpop.xlane.xlu0 %199  ;;  %v224_v45 = vmul.f32 0.00390625, %v212_v40 }
  0xa6   : > { %v220_v47 = vmul.f32 0.00390625, %v200_v43  ;;  %v465_v43 = vsub.s32 1, %v242_v42 }
  0xa7   : > { %v273_v56 = vrot.slane %v224_v45, %v248_v44 }
  0xa8   : > { %v215_v49 = vpop.xlane.xlu1 %214  ;;  %v249_v58 = vrot.slane %v220_v47, %v248_v44 }
  0xa9   : > { %v225_v52 = vmul.f32 0.00390625, %v215_v49  ;;  %v203_v53 = vpop.xlane.xlu0 %202  ;;  %v274_v11 = vsel %vm250_vm1, %v273_v56, %v269_v61 }
  0xaa   : > { %v221_v55 = vmul.f32 0.00390625, %v203_v53  ;;  %v251_v17 = vsel %vm250_vm1, %v249_v58, %v244_v7 }
  0xab   : > { %v278_v59 = vrot.slane %v225_v52, %v255_v48 }
  0xac   : > { %v218_v60 = vpop.xlane.xlu1 %217  ;;  %v256_v62 = vrot.slane %v221_v55, %v255_v48 }
  0xad   : > { %v226_v63 = vmul.f32 0.00390625, %v218_v60  ;;  %v206_v3 = vpop.xlane.xlu0 %205  ;;  %v279_v22 = vsel %vm257_vm2, %v278_v59, %v274_v11 }
  0xae   : > { %v222_v10 = vmul.f32 0.00390625, %v206_v3  ;;  %v258_v24 = vsel %vm257_vm2, %v256_v62, %v251_v17 }
  0xaf   : > { %v283_v16 = vrot.slane %v226_v63, %v262_v57 }
  0xb0   : > { %v263_v23 = vrot.slane %v222_v10, %v262_v57 }
  0xb1   : > { %v284_v25 = vsel %vm264_vm3, %v283_v16, %v279_v22 }
  0xb2   : > { %v265_v26 = vsel %vm264_vm3, %v263_v23, %v258_v24 }
  0xb3   : > { %v286_v27 = vsel %vm285_vm4, %v284_v25, %v265_v26 }
  0xb4   : > { %609 = vmatmul.mubr.msk.f32.vlgmr.msra.gmra.mrb[0].mxu0 %vm287_vm5, %v286_v27 }
 0x187   : > { %v356_v31 = vpop.f32.mrb[0].mxu0 }
 0x188   : > { %v360_v32 = vmax.f32 %v356_v31, 0.0  ;;  %v610_v33 = vpop.f32.mrb[1].mxu0 }
 0x18a   : > { %620 = vmatmul.mubr.msk.f32.vlgmr.msra.gmra.mrb[0].mxu1 %vm287_vm5, %v360_v32 }
 0x25d   : > { %v434_v34 = vpop.f32.mrb[0].mxu1 }
 0x25e   : > { %v585_v35 = vmul.f32 -1.442695, %v434_v34  ;;  %v621_v36 = vpop.f32.mrb[1].mxu1 }
 0x260   : > { %645 = vpow2.f32 %v585_v35 }
 0x26a   : > { %v646_v37 = vpop.eup %645 }
 0x26b   : > { %v441_v38 = vadd.f32 1.0, %v646_v37 }
 0x26d   : > { %647 = vrcp.f32 %v441_v38 }
 0x277   : > { %v648_v40 = vpop.eup %647 }
 0x278   : > { %v447_v41 = vrot.slane %v648_v40, %v446_v39  ;;  %v466_v44 = vrot.slane %v648_v40, %v465_v43 }
 0x27a   : > { %453 = vbcast.lane.b32.xlu1 %v447_v41, 264  ;;  %449 = vbcast.lane.b32.xlu0 %v447_v41, 256 }
 0x27e   : > { %457 = vbcast.lane.b32.xlu1 %v447_v41, 272  ;;  %468 = vbcast.lane.b32.xlu0 %v466_v44, 256 }
 0x282   : > { %461 = vbcast.lane.b32.xlu1 %v447_v41, 280  ;;  %476 = vbcast.lane.b32.xlu0 %v466_v44, 272 }
 0x286   : > { %472 = vbcast.lane.b32.xlu1 %v466_v44, 264 }
 0x28a   : > { %480 = vbcast.lane.b32.xlu1 %v466_v44, 280 }
 0x2ec   : > { %v454_v42 = vpop.permute.xlu1 %453  ;;  %v450_v45 = vpop.permute.xlu0 %449 }
 0x2ed   : > { %v484_v46 = vmul.f32 %v454_v42, %v712_v8  ;;  %v485_v47 = vmul.f32 %v454_v42, %v714_v9  ;;  %v482_v48 = vmul.f32 %v450_v45, %v700_v2  ;;  %v483_v49 = vmul.f32 %v450_v45, %v704_v4 }
 0x2ef   : > { %500 = vst [vmem:[%s773_s10 + $0x10] sm:$0xff] %v484_v46  ;;  %501 = vst [vmem:[%s773_s10 + $0x18] sm:$0xff] %v485_v47 }
 0x2f0   : > { %498 = vst [vmem:[%s773_s10] sm:$0xff] %v482_v48  ;;  %499 = vst [vmem:[%s773_s10 + $0x8] sm:$0xff] %v483_v49  ;;  %v458_v50 = vpop.permute.xlu1 %457  ;;  %v469_v51 = vpop.permute.xlu0 %468 }
 0x2f1   : > { %v486_v52 = vmul.f32 %v458_v50, %v724_v14  ;;  %v487_v8 = vmul.f32 %v458_v50, %v726_v15  ;;  %v490_v9 = vmul.f32 %v469_v51, %v696_v0  ;;  %v491_v2 = vmul.f32 %v469_v51, %v698_v1 }
 0x2f3   : > { %502 = vst [vmem:[%s773_s10 + $0x20] sm:$0xff] %v486_v52  ;;  %503 = vst [vmem:[%s773_s10 + $0x28] sm:$0xff] %v487_v8 }
 0x2f4   : > { %506 = vst [vmem:[%s773_s10 + $0x40] sm:$0xff] %v490_v9  ;;  %507 = vst [vmem:[%s773_s10 + $0x48] sm:$0xff] %v491_v2  ;;  %v462_v4 = vpop.permute.xlu1 %461  ;;  %v477_v53 = vpop.permute.xlu0 %476 }
 0x2f5   : > { %v488_v54 = vmul.f32 %v462_v4, %v736_v20  ;;  %v489_v14 = vmul.f32 %v462_v4, %v738_v21  ;;  %v494_v15 = vmul.f32 %v477_v53, %v720_v12  ;;  %v495_v0 = vmul.f32 %v477_v53, %v722_v13 }
 0x2f7   : > { %504 = vst [vmem:[%s773_s10 + $0x30] sm:$0xff] %v488_v54  ;;  %505 = vst [vmem:[%s773_s10 + $0x38] sm:$0xff] %v489_v14 }
 0x2f8   : > { %510 = vst [vmem:[%s773_s10 + $0x60] sm:$0xff] %v494_v15  ;;  %511 = vst [vmem:[%s773_s10 + $0x68] sm:$0xff] %v495_v0  ;;  %v473_v1 = vpop.permute.xlu1 %472 }
 0x2f9   : > { %v492_v55 = vmul.f32 %v473_v1, %v706_v5  ;;  %v493_v56 = vmul.f32 %v473_v1, %v708_v6 }
 0x2fb   : > { %508 = vst [vmem:[%s773_s10 + $0x50] sm:$0xff] %v492_v55  ;;  %509 = vst [vmem:[%s773_s10 + $0x58] sm:$0xff] %v493_v56 }
 0x2fc   : > { %v481_v20 = vpop.permute.xlu1 %480 }
 0x2fd   : > { %v496_v57 = vmul.f32 %v481_v20, %v732_v18  ;;  %v497_v21 = vmul.f32 %v481_v20, %v734_v19 }
 0x2ff   : > { %512 = vst [vmem:[%s773_s10 + $0x70] sm:$0xff] %v496_v57  ;;  %513 = vst [vmem:[%s773_s10 + $0x78] sm:$0xff] %v497_v21 }
 0x300 PF: > { %s13_s12 = sadd.s32 1, %s655_s12  }
 0x301   : > { %p10_p4 = scmp.ge.s32.totalorder %s13_s12, 4  }
 0x303   :  { %12 = sbr.rel (!%p10_p4) target bundleno = 1 (0x1), region = 62 }

</bundles_post_ra>
